<compile_context>
chip_gen: v7x
topology: tpu7x:2x2x1
jax: 0.10.0
libtpu: 0.0.40
codegen_flags: <defaults>
</compile_context>

<pallas_src>
import jax
import jax.numpy as jnp
from jax.experimental import pallas as pl
from jax.experimental.pallas import tpu as pltpu

_MIB = 1 << 20


def _round_up(x, m):
    return ((x + m - 1) // m) * m


def _vmem_capacity_bytes():
    """Physical VMEM of the current TPU generation (conservative fallback)."""
    try:
        info = pltpu.get_tpu_info()
        cap = getattr(info, "vmem_capacity_bytes", None)
        if cap:
            return int(cap)
    except Exception:
        pass
    return 64 * _MIB  # v7x-sized fallback: safe on every generation


# ---------------------------------------------------------------------------
# Kernels
# ---------------------------------------------------------------------------
def _ffn_kernel_fused(x_ref, w_gate_ref, w_up_ref, b_gate_ref, b_up_ref,
                      w_out_ref, b_out_ref, o_ref):
    """Single d_ff pass: grid = (row tiles,), no accumulator scratch."""
    x = x_ref[...]
    gate = jnp.dot(x, w_gate_ref[...], preferred_element_type=jnp.float32)
    gate = gate + b_gate_ref[...]
    up = jnp.dot(x, w_up_ref[...], preferred_element_type=jnp.float32)
    up = up + b_up_ref[...]
    act = up * (gate * jax.nn.sigmoid(gate))          # SwiGLU
    y = jnp.dot(act.astype(w_out_ref.dtype), w_out_ref[...],
                preferred_element_type=jnp.float32)
    o_ref[...] = (y + b_out_ref[...]).astype(o_ref.dtype)


def _ffn_kernel_streamed(x_ref, w_gate_ref, w_up_ref, b_gate_ref, b_up_ref,
                         w_out_ref, b_out_ref, o_ref, acc_ref):
    """d_ff streamed as last ('arbitrary') grid axis with resident f32 acc."""
    f = pl.program_id(1)

    @pl.when(f == 0)
    def _():
        acc_ref[...] = jnp.zeros_like(acc_ref)

    x = x_ref[...]
    gate = jnp.dot(x, w_gate_ref[...], preferred_element_type=jnp.float32)
    gate = gate + b_gate_ref[...]
    up = jnp.dot(x, w_up_ref[...], preferred_element_type=jnp.float32)
    up = up + b_up_ref[...]
    act = up * (gate * jax.nn.sigmoid(gate))
    acc_ref[...] += jnp.dot(act.astype(w_out_ref.dtype), w_out_ref[...],
                            preferred_element_type=jnp.float32)

    @pl.when(f == pl.num_programs(1) - 1)
    def _():
        o_ref[...] = (acc_ref[...] + b_out_ref[...]).astype(o_ref.dtype)


# ---------------------------------------------------------------------------
# Generation-aware tile / VMEM planning
# ---------------------------------------------------------------------------
def _choose_plan(M, d_model, d_ff, itemsize, vmem_cap):
    """Returns (tm, tf, fused, vmem_estimate, vmem_budget)."""
    budget = max(vmem_cap - 16 * _MIB, 32 * _MIB)     # leave compiler headroom
    big_vmem = vmem_cap >= 96 * _MIB                  # v5e/v6e: 128 MiB; v7x: 64
    tm_cap = 1024 if big_vmem else 512
    tf_cands = (1024, 512, 256, 128) if big_vmem else (512, 256, 128)

    # Row tile: as large as the ridge wants, but keep >=2 row tiles whenever
    # possible so the "parallel" axis shards across v7x's two TensorCores.
    n_rows = max(pl.cdiv(M, tm_cap), 2 if M > 8 else 1)
    tm = _round_up(pl.cdiv(M, n_rows), 8)

    def fused_bytes(tm_):
        return (4 * tm_ * d_model * itemsize          # x + out tiles, 2-buffered
                + 6 * d_model * d_ff * itemsize       # Wg+Wu+Wo, 2-buffered
                + 2 * (2 * d_ff + d_model) * 4        # f32 biases, 2-buffered
                + 3 * tm_ * d_ff * 4                  # gate/up/act f32 temps
                + tm_ * d_model * 4)                  # f32 result temp

    def stream_bytes(tm_, tf_):
        return (4 * tm_ * d_model * itemsize
                + 6 * d_model * tf_ * itemsize
                + 2 * (2 * tf_ + d_model) * 4
                + tm_ * d_model * 4                   # f32 accumulator scratch
                + 3 * tm_ * tf_ * 4)

    # Single-pass path when all three weight slabs comfortably fit VMEM.
    if fused_bytes(tm) <= min(budget, int(0.4 * vmem_cap)):
        return tm, d_ff, True, fused_bytes(tm), budget

    # Otherwise stream d_ff: largest lane-aligned divisor that fits.
    tf = None
    for cand in tf_cands:
        if d_ff % cand == 0 and stream_bytes(tm, cand) <= int(0.7 * budget):
            tf = cand
            break
    if tf is None:
        for cand in reversed(tf_cands):
            if d_ff % cand == 0:
                tf = cand
                break
    if tf is None:
        tf = d_ff   # no 128-aligned divisor -> single d_ff pass

    bytes_fn = fused_bytes if tf == d_ff else (lambda t: stream_bytes(t, tf))
    while bytes_fn(tm) > budget and tm > 8:
        tm = max(8, _round_up(tm // 2, 8))

    fused = tf == d_ff
    est = fused_bytes(tm) if fused else stream_bytes(tm, tf)
    return tm, tf, fused, est, budget


# ---------------------------------------------------------------------------
# Wrapper
# ---------------------------------------------------------------------------
def feedforward_pallas(x, w_in, b_in, w_out, b_out, *,
                       compute_dtype=jnp.bfloat16, tm=None, tf=None):
    """x: [B, S, d_model] -> [B, S, d_model].

    w_in : [d_model, 2*d_ff]  (== fc_in.weight.T),  b_in : [2*d_ff]
    w_out: [d_ff, d_model]    (== fc_out.weight.T), b_out: [d_model]

    MXU operands are cast to `compute_dtype` (bf16 by default); accumulation
    and biases are f32; output is returned in x.dtype.
    """
    B, S, d_model = x.shape
    d_ff = w_in.shape[1] // 2
    M = B * S
    out_dtype = x.dtype
    cdt = jnp.dtype(compute_dtype) if compute_dtype is not None else jnp.dtype(x.dtype)

    vmem_cap = _vmem_capacity_bytes()
    tm_a, tf_a, _, est, budget = _choose_plan(M, d_model, d_ff, cdt.itemsize, vmem_cap)
    tm = tm_a if tm is None else tm
    tf = tf_a if tf is None else tf
    assert d_ff % tf == 0, "d_ff tile must divide d_ff"
    fused = tf == d_ff
    n_f = d_ff // tf

    # Pre-split fc_in so the kernel never slices the fused hidden; cast matmul
    # operands to the MXU-native dtype.
    x2d = x.reshape(M, d_model).astype(cdt)
    w_gate = w_in[:, :d_ff].astype(cdt)
    w_up = w_in[:, d_ff:].astype(cdt)
    w_o = w_out.astype(cdt)
    b_gate = b_in[:d_ff].reshape(1, d_ff).astype(jnp.float32)
    b_up = b_in[d_ff:].reshape(1, d_ff).astype(jnp.float32)
    b_o = b_out.reshape(1, d_model).astype(jnp.float32)

    # Pad token count up to a multiple of the row tile.
    M_pad = _round_up(M, tm)
    if M_pad != M:
        x2d = jnp.pad(x2d, ((0, M_pad - M), (0, 0)))

    vmem_limit = int(min(max(est * 3 // 2, 32 * _MIB), budget))

    if fused:
        grid = (M_pad // tm,)
        in_specs = [
            pl.BlockSpec((tm, d_model), lambda i: (i, 0)),     # x rows
            pl.BlockSpec((d_model, d_ff), lambda i: (0, 0)),   # W_gate
            pl.BlockSpec((d_model, d_ff), lambda i: (0, 0)),   # W_up
            pl.BlockSpec((1, d_ff), lambda i: (0, 0)),         # b_gate
            pl.BlockSpec((1, d_ff), lambda i: (0, 0)),         # b_up
            pl.BlockSpec((d_ff, d_model), lambda i: (0, 0)),   # W_out
            pl.BlockSpec((1, d_model), lambda i: (0, 0)),      # b_out
        ]
        out_specs = pl.BlockSpec((tm, d_model), lambda i: (i, 0))
        scratch = []
        kernel = _ffn_kernel_fused
        dims = ("parallel",)
    else:
        grid = (M_pad // tm, n_f)
        in_specs = [
            pl.BlockSpec((tm, d_model), lambda i, f: (i, 0)),   # x rows
            pl.BlockSpec((d_model, tf), lambda i, f: (0, f)),   # W_gate
            pl.BlockSpec((d_model, tf), lambda i, f: (0, f)),   # W_up
            pl.BlockSpec((1, tf), lambda i, f: (0, f)),         # b_gate
            pl.BlockSpec((1, tf), lambda i, f: (0, f)),         # b_up
            pl.BlockSpec((tf, d_model), lambda i, f: (f, 0)),   # W_out
            pl.BlockSpec((1, d_model), lambda i, f: (0, 0)),    # b_out
        ]
        out_specs = pl.BlockSpec((tm, d_model), lambda i, f: (i, 0))
        scratch = [pltpu.VMEM((tm, d_model), jnp.float32)]
        kernel = _ffn_kernel_streamed
        dims = ("parallel", "arbitrary")

    out2d = pl.pallas_call(
        kernel,
        out_shape=jax.ShapeDtypeStruct((M_pad, d_model), out_dtype),
        grid_spec=pltpu.PrefetchScalarGridSpec(
            num_scalar_prefetch=0,
            grid=grid,
            in_specs=in_specs,
            out_specs=out_specs,
            scratch_shapes=scratch,
        ),
        compiler_params=pltpu.CompilerParams(
            dimension_semantics=dims,
            vmem_limit_bytes=vmem_limit,
        ),
    )(x2d, w_gate, w_up, b_gate, b_up, w_o, b_o)

    if M_pad != M:
        out2d = out2d[:M]
    return out2d.reshape(B, S, d_model)


def feedforward_ref(x, w_in, b_in, w_out, b_out):
    """Pure-JAX f32 reference matching the PyTorch forward (eval mode)."""
    d_ff = w_in.shape[1] // 2
    h = jnp.einsum("bsd,df->bsf", x, w_in) + b_in
    gate, x_proj = h[..., :d_ff], h[..., d_ff:]
    act = x_proj * jax.nn.silu(gate)
    return jnp.einsum("bsf,fd->bsd", act, w_out) + b_out


if __name__ == "__main__":
    # Module config (small): d_model=32, d_ff_arg=48 -> int(2*48//3) = 32
    d_model = 32
    d_ff_arg = 48
    d_ff = int(2 * d_ff_arg // 3)   # 32
    B, S = 2, 8

    key = jax.random.PRNGKey(0)
    kx, k1, k2, k3, k4 = jax.random.split(key, 5)

    x = jax.random.normal(kx, (B, S, d_model), dtype=jnp.float32)
    # Deterministic param init (nn.Linear-like scaling), stored as [in, out].
    w_in = jax.random.normal(k1, (d_model, 2 * d_ff), dtype=jnp.float32) / jnp.sqrt(d_model)
    b_in = jax.random.normal(k2, (2 * d_ff,), dtype=jnp.float32) * 0.01
    w_out = jax.random.normal(k3, (d_ff, d_model), dtype=jnp.float32) / jnp.sqrt(d_ff)
    b_out = jax.random.normal(k4, (d_model,), dtype=jnp.float32) * 0.01

    out = feedforward_pallas(x, w_in, b_in, w_out, b_out)
    out = jax.block_until_ready(out)

    ref = feedforward_ref(x, w_in, b_in, w_out, b_out)
    assert out.shape == (B, S, d_model)
    # bf16 MXU operands with f32 accumulation -> small relative error vs f32 ref.
    assert jnp.allclose(out, ref, atol=5e-2, rtol=5e-2), "mismatch vs reference"

    print("KERNEL_OK")
</pallas_src>

<mosaic_0001>
module attributes {stable_mosaic.version = 11 : i64} {
  func.func @_ffn_kernel_fused(%arg0: i32, %arg1: memref<8x32xbf16, #tpu.memory_space<vmem>>, %arg2: memref<32x32xbf16, #tpu.memory_space<vmem>>, %arg3: memref<32x32xbf16, #tpu.memory_space<vmem>>, %arg4: memref<1x32xf32, #tpu.memory_space<vmem>>, %arg5: memref<1x32xf32, #tpu.memory_space<vmem>>, %arg6: memref<32x32xbf16, #tpu.memory_space<vmem>>, %arg7: memref<1x32xf32, #tpu.memory_space<vmem>>, %arg8: memref<8x32xf32, #tpu.memory_space<vmem>>) attributes {dimension_semantics = [#tpu.dimension_semantics<parallel>], iteration_bounds = array<i64: 2>, scalar_prefetch = 0 : i64, scratch_operands = 0 : i64, tpu.core_type = #tpu.core_type<tc>, window_params = [{transform_indices = @transform_0, window_bounds = array<i64: 8, 32>}, {pipeline_mode = #tpu.pipeline_mode<synchronous>, transform_indices = @transform_1, window_bounds = array<i64: 32, 32>}, {pipeline_mode = #tpu.pipeline_mode<synchronous>, transform_indices = @transform_2, window_bounds = array<i64: 32, 32>}, {pipeline_mode = #tpu.pipeline_mode<synchronous>, transform_indices = @transform_3, window_bounds = array<i64: 1, 32>}, {pipeline_mode = #tpu.pipeline_mode<synchronous>, transform_indices = @transform_4, window_bounds = array<i64: 1, 32>}, {pipeline_mode = #tpu.pipeline_mode<synchronous>, transform_indices = @transform_5, window_bounds = array<i64: 32, 32>}, {pipeline_mode = #tpu.pipeline_mode<synchronous>, transform_indices = @transform_6, window_bounds = array<i64: 1, 32>}, {transform_indices = @transform_7, window_bounds = array<i64: 8, 32>}]} {
    %c0 = arith.constant 0 : index
    %c0_0 = arith.constant 0 : index
    %0 = vector.load %arg1[%c0, %c0_0] : memref<8x32xbf16, #tpu.memory_space<vmem>>, vector<8x32xbf16>
    %c0_1 = arith.constant 0 : index
    %c0_2 = arith.constant 0 : index
    %1 = vector.load %arg2[%c0_1, %c0_2] : memref<32x32xbf16, #tpu.memory_space<vmem>>, vector<32x32xbf16>
    %cst = arith.constant dense<0.000000e+00> : vector<8x32xf32>
    %2 = tpu.matmul %0, %1, %cst {dimension_numbers = #tpu.dot_dimension_numbers<[1], [0], [0], [1], [0, 0, 1, 1], [], []>} : vector<8x32xbf16>, vector<32x32xbf16>, vector<8x32xf32> -> vector<8x32xf32>
    %c0_3 = arith.constant 0 : index
    %c0_4 = arith.constant 0 : index
    %3 = vector.load %arg4[%c0_3, %c0_4] : memref<1x32xf32, #tpu.memory_space<vmem>>, vector<1x32xf32>
    %4 = vector.broadcast %3 : vector<1x32xf32> to vector<8x32xf32>
    %5 = arith.addf %2, %4 : vector<8x32xf32>
    %c0_5 = arith.constant 0 : index
    %c0_6 = arith.constant 0 : index
    %6 = vector.load %arg3[%c0_5, %c0_6] : memref<32x32xbf16, #tpu.memory_space<vmem>>, vector<32x32xbf16>
    %cst_7 = arith.constant dense<0.000000e+00> : vector<8x32xf32>
    %7 = tpu.matmul %0, %6, %cst_7 {dimension_numbers = #tpu.dot_dimension_numbers<[1], [0], [0], [1], [0, 0, 1, 1], [], []>} : vector<8x32xbf16>, vector<32x32xbf16>, vector<8x32xf32> -> vector<8x32xf32>
    %c0_8 = arith.constant 0 : index
    %c0_9 = arith.constant 0 : index
    %8 = vector.load %arg5[%c0_8, %c0_9] : memref<1x32xf32, #tpu.memory_space<vmem>>, vector<1x32xf32>
    %9 = vector.broadcast %8 : vector<1x32xf32> to vector<8x32xf32>
    %10 = arith.addf %7, %9 : vector<8x32xf32>
    %11 = arith.negf %5 : vector<8x32xf32>
    %12 = math.exp %11 : vector<8x32xf32>
    %cst_10 = arith.constant 1.000000e+00 : f32
    %13 = vector.broadcast %cst_10 : f32 to vector<8x32xf32>
    %14 = arith.addf %13, %12 : vector<8x32xf32>
    %15 = arith.divf %13, %14 : vector<8x32xf32>
    %16 = arith.mulf %5, %15 : vector<8x32xf32>
    %17 = arith.mulf %10, %16 : vector<8x32xf32>
    %18 = arith.truncf %17 : vector<8x32xf32> to vector<8x32xbf16>
    %c0_11 = arith.constant 0 : index
    %c0_12 = arith.constant 0 : index
    %19 = vector.load %arg6[%c0_11, %c0_12] : memref<32x32xbf16, #tpu.memory_space<vmem>>, vector<32x32xbf16>
    %cst_13 = arith.constant dense<0.000000e+00> : vector<8x32xf32>
    %20 = tpu.matmul %18, %19, %cst_13 {dimension_numbers = #tpu.dot_dimension_numbers<[1], [0], [0], [1], [0, 0, 1, 1], [], []>} : vector<8x32xbf16>, vector<32x32xbf16>, vector<8x32xf32> -> vector<8x32xf32>
    %c0_14 = arith.constant 0 : index
    %c0_15 = arith.constant 0 : index
    %21 = vector.load %arg7[%c0_14, %c0_15] : memref<1x32xf32, #tpu.memory_space<vmem>>, vector<1x32xf32>
    %22 = vector.broadcast %21 : vector<1x32xf32> to vector<8x32xf32>
    %23 = arith.addf %20, %22 : vector<8x32xf32>
    %c0_16 = arith.constant 0 : index
    %c0_17 = arith.constant 0 : index
    %24 = vector.load %arg8[%c0_16, %c0_17] : memref<8x32xf32, #tpu.memory_space<vmem>>, vector<8x32xf32>
    tpu.vector_store %arg8[%c0_16, %c0_17], %23 {strides = array<i32>} : memref<8x32xf32, #tpu.memory_space<vmem>>, vector<8x32xf32>,
    return
  }
  func.func @transform_0(%arg0: i32) -> (i32, i32) {
    %c0_i32 = arith.constant 0 : i32
    %c0_i32_0 = arith.constant 0 : i32
    return %arg0, %c0_i32 : i32, i32
  }
  func.func @transform_1(%arg0: i32) -> (i32, i32) {
    %c0_i32 = arith.constant 0 : i32
    %c0_i32_0 = arith.constant 0 : i32
    %c0_i32_1 = arith.constant 0 : i32
    return %c0_i32, %c0_i32_0 : i32, i32
  }
  func.func @transform_2(%arg0: i32) -> (i32, i32) {
    %c0_i32 = arith.constant 0 : i32
    %c0_i32_0 = arith.constant 0 : i32
    %c0_i32_1 = arith.constant 0 : i32
    return %c0_i32, %c0_i32_0 : i32, i32
  }
  func.func @transform_3(%arg0: i32) -> (i32, i32) {
    %c0_i32 = arith.constant 0 : i32
    %c0_i32_0 = arith.constant 0 : i32
    %c0_i32_1 = arith.constant 0 : i32
    return %c0_i32, %c0_i32_0 : i32, i32
  }
  func.func @transform_4(%arg0: i32) -> (i32, i32) {
    %c0_i32 = arith.constant 0 : i32
    %c0_i32_0 = arith.constant 0 : i32
    %c0_i32_1 = arith.constant 0 : i32
    return %c0_i32, %c0_i32_0 : i32, i32
  }
  func.func @transform_5(%arg0: i32) -> (i32, i32) {
    %c0_i32 = arith.constant 0 : i32
    %c0_i32_0 = arith.constant 0 : i32
    %c0_i32_1 = arith.constant 0 : i32
    return %c0_i32, %c0_i32_0 : i32, i32
  }
  func.func @transform_6(%arg0: i32) -> (i32, i32) {
    %c0_i32 = arith.constant 0 : i32
    %c0_i32_0 = arith.constant 0 : i32
    %c0_i32_1 = arith.constant 0 : i32
    return %c0_i32, %c0_i32_0 : i32, i32
  }
  func.func @transform_7(%arg0: i32) -> (i32, i32) {
    %c0_i32 = arith.constant 0 : i32
    %c0_i32_0 = arith.constant 0 : i32
    return %arg0, %c0_i32 : i32, i32
  }
}

</mosaic_0001>

<bundles_post_ra>
// kernel: tpu_custom_call.1
= control target key start
LH: loop header
LB: loop body
LE: loop exit
PB: predicated region body
PF: predicated region fallthrough
CT: control target
= control target key end

     0   :  { %12 = vsyncpa [#allocation3], 0  ;;  %s1235_s0 = inlined_call_operand.hbm [shape: bf16[16,32], index: 0, kind: input, shape index: {}]   ;;  %s1236_s1 = inlined_call_operand.hbm [shape: bf16[32,32], index: 1, kind: input, shape index: {}]   ;;  %s1237_s2 = inlined_call_operand.hbm [shape: bf16[32,32], index: 2, kind: input, shape index: {}]   ;;  %s1238_s3 = inlined_call_operand.vmem [shape: f32[1,32], index: 3, kind: input, shape index: {}]   ;;  %s1239_s4 = inlined_call_operand.vmem [shape: f32[1,32], index: 4, kind: input, shape index: {}]   ;;  %s1240_s5 = inlined_call_operand.vmem [shape: bf16[32,32], index: 5, kind: input, shape index: {}]   ;;  %s1241_s6 = inlined_call_operand.vmem [shape: f32[1,32], index: 6, kind: input, shape index: {}]   ;;  %s1242_s7 = inlined_call_operand.hbm [shape: f32[16,32], index: 7, kind: output, shape index: {}]  }
   0x1   :  { %14 = vsyncpa [#allocation3 + $0x1], 0 }
   0x2   :  { %15 = vsyncpa [#allocation6], 0 }
   0x3   :  { %16 = vsyncpa [#allocation4], 0 }
   0x4   :  { %18 = vsyncpa [#allocation4 + $0x1], 0  ;;  %s983_s24 = smov 0   ;;  %s985_s25 = smov 0  }
   0x5   :  { %s987_s26 = smov 0   ;;  %s989_s27 = smov 0  }
   0x6 LB: > { %s1004_s28 = sadd.s32 4294967295, %s933_s27   ;;  %s634_s29 = sadd.s32 4294967294, %s933_s27   ;;  %s933_s27 = sphi %s989_s27, %s1262_s27   ;;  %s929_s26 = sphi %s987_s26, %s1261_s26   ;;  %s925_s25 = sphi %s985_s25, %s1260_s25   ;;  %s921_s24 = sphi %s983_s24, %s1259_s24  }
   0x7   : > { %p44_p0 = scmp.ne.s32.totalorder %s925_s25, %s921_s24  ;;  %p1243_p1 = scmp.eq.s32.totalorder %s1004_s28, 0 }
   0x8   : > { %p200_p3 = scmp.eq.s32.totalorder %s634_s29, 1  ;;  %p635_p5 = scmp.ge.s32.totalorder %s933_s27, 1 }
   0x9   : > { %p1013_p4 = por %p1243_p1, %p44_p0  ;;  %p207_p7 = scmp.lt.s32.totalorder %s933_s27, 3 }
   0xa   : > { %p1018_p6 = por %p200_p3, %p44_p0  ;;  %s935_s10 = smov [#allocation5]  }
   0xb   : > { %s1246_s30 = scalar_select %p1013_p4, 1, 0 }
   0xc   : > { %s1247_s8 = scalar_select %p1018_p6, 1, 0 }
   0xd   : > { %p1023_p8 = pnand %p635_p5, %p207_p7  ;;  %s219_s11 = sshll.u32 %s935_s10, 4  ;;  %s1027_s11 = int_to_ptr.vmem [resolvable:$true] %s219_s11 }
   0xe   : > { %s936_s13 = smov [#allocation7]   ;;  %s777_s17 = scalar_lea.hbm %s1236_s1, 256 }
   0xf   : > { %p708_p9 = pneg %p1023_p8  ;;  %s232_s14 = sshll.u32 %s936_s13, 4  ;;  %s1038_s14 = int_to_ptr.vmem [resolvable:$true] %s232_s14 }
  0x10   : > { %p778_p12 = scmp.ne.s32.totalorder %s1236_s1, %s777_s17  ;;  %p784_p5 = scmp.lt.u32.totalorder %s777_s17, %s1236_s1 }
  0x11   : > { %p1034_p11 = pnand %p708_p9, %p1243_p1 }
  0x13   : > { %p779_p13 = pneg %p1034_p11 }
  0x15   : > { %p780_p0 = pnand %p779_p13, %p778_p12 }
  0x17   : > { %p781_p3 = pneg %p780_p0 }
  0x19   : > { %p786_p7 = pnand %p784_p5, %p781_p3 }
  0x1b   : > { %789 = shalt.err (!%p786_p7)
}
  0x1c   : > { %s790_s22 = scalar_lea.vmem %s1027_s11, 256  ;;  %p798_p2 = scmp.lt.s32.totalorder %s1027_s11, %s1027_s11 }
  0x1d   : > { %p791_p9 = scmp.ne.s32.totalorder %s1027_s11, %s790_s22  ;;  %p799_p12 = scmp.lt.s32.totalorder %s790_s22, %s790_s22 }
  0x1f   : > { %p793_p10 = pnand %p791_p9, %p779_p13  ;;  %p800_p0 = por %p799_p12, %p798_p2 }
  0x21   : > { %p794_p1 = pneg %p793_p10 }
  0x23   : > { %p801_p6 = pnand %p800_p0, %p794_p1 }
  0x25   : > { %804 = shalt.err (!%p801_p6)
}
  0x26   : > { %s937_s23 = smov 64   ;;  %s938_s29 = smov 4  }
  0x27   : > { %711 = dma.hbm_to_vmem [thread:$0]  (!%p1034_p11), %s1236_s1, 256, %s1027_s11, [#allocation6], %s937_s23, %s937_s23, %s938_s29  }
  0x28   : > { %s805_s17 = scalar_lea.hbm %s1237_s2, 256 }
  0x29   : > { %p806_p2 = scmp.ne.s32.totalorder %s1237_s2, %s805_s17  ;;  %p812_p10 = scmp.lt.u32.totalorder %s805_s17, %s1237_s2 }
  0x2b   : > { %p808_p1 = pnand %p806_p2, %p779_p13 }
  0x2d   : > { %p809_p6 = pneg %p808_p1 }
  0x2f   : > { %p814_p3 = pnand %p812_p10, %p809_p6 }
  0x31   : > { %817 = shalt.err (!%p814_p3)
}
  0x32   : > { %s818_s11 = scalar_lea.vmem %s1038_s14, 256  ;;  %p826_p12 = scmp.lt.s32.totalorder %s1038_s14, %s1038_s14 }
  0x33   : > { %p819_p5 = scmp.ne.s32.totalorder %s1038_s14, %s818_s11  ;;  %p827_p0 = scmp.lt.s32.totalorder %s818_s11, %s818_s11 }
  0x35   : > { %p821_p7 = pnand %p819_p5, %p779_p13  ;;  %p828_p2 = por %p827_p0, %p826_p12 }
  0x37   : > { %p822_p9 = pneg %p821_p7 }
  0x39   : > { %p829_p1 = pnand %p828_p2, %p822_p9 }
  0x3b   : > { %832 = shalt.err (!%p829_p1)
}
  0x3c   : > { %714 = dma.hbm_to_vmem [thread:$0]  (!%p1034_p11), %s1237_s2, 256, %s1038_s14, [#allocation6], %s937_s23, %s937_s23, %s938_s29  }
  0x3d   : > { %s1093_s13 = sadd.s32 1, %s933_s27   ;;  %s31_s12 = sadd.s32 1, %s929_s26 }
  0x3e   : > { %s28_s15 = ssub.s32 %s933_s27, %s1093_s13  ;;  %p38_p13 = scmp.ne.s32.totalorder %s929_s26, %s925_s25 }
  0x3f   : > { %p29_p6 = scmp.eq.s32.totalorder %s28_s15, 0  ;;  %p39_p10 = scmp.eq.s32.totalorder %s933_s27, 0 }
  0x40   : > { %p1250_p3 = scmp.eq.s32.totalorder %s1004_s28, 1  ;;  %p725_p7 = scmp.lt.s32.totalorder %s933_s27, 2 }
  0x41   : > { %s1109_s17 = scalar_select %p29_p6, %s929_s26, %s31_s12  }
  0x42   : > { %p1103_p5 = por %p1250_p3, %p38_p13  ;;  %p40_p9 = por %p39_p10, %p38_p13 }
  0x43   : > { %s258_s18 = sand.u32 1, %s929_s26   ;;  %s640_s14 = sshll.u32 %s933_s27, 6 }
  0x44   : > { %s1251_s16 = scalar_select %p1103_p5, 1, 0 }
  0x45   : > { %s639_s19 = sshll.u32 %s258_s18, 2  ;;  %s1116_s20 = scalar_lea.hbm %s1235_s0, %s640_s14 }
  0x46   : > { %s262_s21 = scalar_lea.vmem [#allocation2], %s639_s19  ;;  %p1120_p11 = pnand %p725_p7, %p40_p9 }
  0x47   : > { %s269_s11 = sshll.u32 %s262_s21, 4  ;;  %s259_s10 = scalar_lea.sflag [#allocation3], %s258_s18  ;;  %s1118_s11 = int_to_ptr.vmem [resolvable:$true] %s269_s11 }
  0x48   : > { %s833_s12 = scalar_lea.hbm %s1116_s20, 64  ;;  %p835_p0 = pneg %p1120_p11 }
  0x49   : > { %p834_p12 = scmp.ne.s32.totalorder %s1116_s20, %s833_s12  ;;  %s838_s14 = scalar_lea.hbm %s1235_s0, 128 }
  0x4a   : > { %p839_p13 = scmp.lt.u32.totalorder %s1116_s20, %s1235_s0  ;;  %p840_p6 = scmp.lt.u32.totalorder %s838_s14, %s833_s12 }
  0x4b   : > { %p836_p2 = pnand %p835_p0, %p834_p12  ;;  %p842_p3 = scmp.lt.u32.totalorder %s833_s12, %s1116_s20 }
  0x4c   : > { %p841_p10 = por %p840_p6, %p839_p13 }
  0x4d   : > { %p837_p1 = pneg %p836_p2 }
  0x4e   : > { %p843_p7 = por %p842_p3, %p841_p10 }
  0x50   : > { %p844_p9 = pnand %p843_p7, %p837_p1 }
  0x52   : > { %847 = shalt.err (!%p844_p9)
}
  0x53   : > { %s848_s18 = scalar_lea.vmem %s1118_s11, 64  ;;  %s939_s21 = smov [#allocation2]  }
  0x54   : > { %p849_p12 = scmp.ne.s32.totalorder %s1118_s11, %s848_s18  ;;  %s853_s15 = sshll.u32 %s939_s21, 4  ;;  %s854_s15 = int_to_ptr.vmem [resolvable:$false] %s853_s15 }
  0x55   : > { %s855_s19 = scalar_lea.vmem %s854_s15, 128  ;;  %p856_p4 = scmp.lt.s32.totalorder %s1118_s11, %s854_s15 }
  0x56   : > { %p851_p2 = pnand %p849_p12, %p835_p0  ;;  %p857_p13 = scmp.lt.s32.totalorder %s855_s19, %s848_s18 }
  0x58   : > { %p852_p5 = pneg %p851_p2  ;;  %p858_p6 = por %p857_p13, %p856_p4 }
  0x5a   : > { %p859_p10 = pnand %p858_p6, %p852_p5 }
  0x5c   : > { %862 = shalt.err (!%p859_p10)
}
  0x5d   : > { %718 = dma.hbm_to_vmem [thread:$0]  (!%p1120_p11), %s1116_s20, 64, %s1118_s11, %s259_s10  }
  0x5e   : > { %278 = sbr.rel (%p1023_p8) target bundleno = 589 (0x24d), region = 48  ;;  %s1152_s12 = sand.u32 (!%p1023_p8), 1, %s925_s25  }
  0x5f   : > { %s642_s14 = sshll.u32 (!%p1023_p8), %s1152_s12, 2  ;;  %s281_s23 = scalar_lea.sflag (!%p1023_p8), [#allocation3], %s1152_s12 }
  0x60   : > { %s284_s29 = scalar_lea.vmem (!%p1023_p8), [#allocation2], %s642_s14  ;;  %p1253_p4 = scmp.ne.s32.totalorder (!%p1023_p8), %s1246_s30, 0 }
  0x65   : > { %908 = dma.done.wait (%p1253_p4), %s281_s23, 64  }
  0x66   : > { %910 = vsyncadd (%p1253_p4), %s281_s23, 4294967232  ;;  %p1254_p5 = scmp.eq.s32.totalorder %s1004_s28, 0 }
  0x68   : > { %912 = dma.done.wait (%p1254_p5), [#allocation6], 512   ;;  %p1255_p11 = pmov %p1254_p5 }
  0x69   : > { %v940_v0 = vmov 0.0   ;;  %vm941_vm0 = vmmov 0   ;;  %v767_v1 = vld [vmem:[#allocation5] sm:$0xff]   ;;  %v768_v2 = vld [vmem:[#allocation5 + $0x8] sm:$0xff]   ;;  %v769_v3 = vld [vmem:[#allocation7] sm:$0xff]   ;;  %vm348_vm1 = vcmask 261120  }
  0x6a   : > { %914 = vsyncadd (%p1255_p11), [#allocation6], 4294966784  ;;  %672 = vmatprep.subr.bf16.mxu0 %v940_v0  ;;  %676 = vmatprep.mubr.msk.bf16.mxu0 %vm941_vm0, %v940_v0  ;;  %v770_v4 = vld [vmem:[#allocation7 + $0x8] sm:$0xff]   ;;  %v771_v6 = vld [vmem:[%s1240_s5] sm:$0xff]   ;;  %s645_s15 = sshll.u32 %s1152_s12, 3  ;;  %s660_s23 = sshll.u32 %s1004_s28, 7 }
  0x6b   : > { %680 = vmatprep.subr.bf16.mxu1 %v940_v0  ;;  %684 = vmatprep.mubr.msk.bf16.mxu1 %vm941_vm0, %v940_v0  ;;  %v324_v5 = vld [vmem:[%s284_s29] sm:$0xf]  ;;  %v772_v7 = vld [vmem:[%s1240_s5 + $0x8] sm:$0xff]   ;;  %v646_v8 = vld [vmem:[%s1238_s3] ss:$0 sm:$0xff]  ;;  %s322_s29 = scalar_lea.vmem [#allocation8], %s645_s15  ;;  %s1190_s11 = scalar_lea.hbm %s1242_s7, %s660_s23 }
  0x6c   : > { %673 = vmatpush3.bf16.msra.mxu0 %v767_v1  ;;  %681 = vmatpush3.bf16.msra.mxu1 %v769_v3  ;;  %v650_v21 = vld [vmem:[%s1239_s4] ss:$0 sm:$0xff]  ;;  %s545_s30 = sshll.u32 %s322_s29, 4  ;;  %s532_s28 = scalar_lea.sflag [#allocation4], %s1152_s12  ;;  %s1192_s30 = int_to_ptr.vmem [resolvable:$true] %s545_s30 }
  0x6d   : > { %674 = vmatprep.subr.bf16.mxu0 %v940_v0  ;;  %682 = vmatprep.subr.bf16.mxu1 %v940_v0  ;;  %v655_v27 = vld [vmem:[%s1241_s6] ss:$0 sm:$0xff]  ;;  %s863_s22 = scalar_lea.vmem %s1192_s30, 128  ;;  %p1256_p0 = scmp.ne.s32.totalorder %s1251_s16, 0 }
  0x6e   : > { %p864_p8 = scmp.ne.s32.totalorder %s1192_s30, %s863_s22  ;;  %s942_s10 = smov [#allocation8]  }
  0x6f   : > { %s867_s18 = sshll.u32 %s942_s10, 4  ;;  %s868_s18 = int_to_ptr.vmem [resolvable:$false] %s867_s18 }
  0x70   : > { %675 = vmatpush3.bf16.msra.mxu0 %v768_v2  ;;  %683 = vmatpush3.bf16.msra.mxu1 %v770_v4  ;;  %p865_p1 = pnand %p864_p8, %p1256_p0  ;;  %s869_s21 = scalar_lea.vmem %s868_s18, 256 }
  0x71   : > { %688 = vmatprep.subr.bf16.mxu0 %v940_v0  ;;  %p870_p7 = scmp.lt.s32.totalorder %s1192_s30, %s868_s18  ;;  %p871_p9 = scmp.lt.s32.totalorder %s869_s21, %s863_s22 }
  0x72   : > { %p866_p3 = pneg %p865_p1 }
  0x73   : > { %677 = vmatmul.mubr.msk.bf16.vlgmr.msra.gmra.mrb[0].mxu0 %vm348_vm1, %v324_v5  ;;  %685 = vmatmul.mubr.msk.bf16.vlgmr.msra.gmra.mrb[0].mxu1 %vm348_vm1, %v324_v5  ;;  %p872_p12 = por %p871_p9, %p870_p7 }
  0x74   : > { %692 = vmatprep.mubr.msk.bf16.mxu0 %vm941_vm0, %v940_v0  ;;  %689 = vmatpush3.bf16.msra.mxu0 %v771_v6 }
  0x75   : > { %690 = vmatprep.subr.bf16.mxu0 %v940_v0  ;;  %p873_p2 = pnand %p872_p12, %p866_p3 }
  0x78   : > { %691 = vmatpush3.bf16.msra.mxu0 %v772_v7 }
 0x146   : > { %v386_v9 = vpop.f32.mrb[0].mxu0  ;;  %v449_v15 = vpop.f32.mrb[0].mxu1 }
 0x147   : > { %v387_v10 = vadd.f32 %v646_v8, %v386_v9  ;;  %v678_v11 = vpop.f32.mrb[1].mxu0  ;;  %v686_v16 = vpop.f32.mrb[1].mxu1  ;;  %v450_v22 = vadd.f32 %v650_v21, %v449_v15 }
 0x148   : > { %v389_v12 = vpop.f32.mrb[2].mxu0  ;;  %v452_v17 = vpop.f32.mrb[2].mxu1 }
 0x149   : > { %v654_v13 = vmul.f32 -1.442695, %v387_v10  ;;  %v679_v14 = vpop.f32.mrb[3].mxu0  ;;  %v687_v18 = vpop.f32.mrb[3].mxu1 }
 0x14b   : > { %773 = vpow2.f32 %v654_v13 }
 0x155   : > { %v774_v19 = vpop.eup %773 }
 0x156   : > { %v458_v20 = vadd.f32 1.0, %v774_v19 }
 0x158   : > { %775 = vrcp.f32 %v458_v20 }
 0x162   : > { %v776_v23 = vpop.eup %775 }
 0x163   : > { %v461_v24 = vmul.f32 %v776_v23, %v387_v10 }
 0x165   : > { %v462_v25 = vmul.f32 %v461_v24, %v450_v22 }
 0x167   : > { %v463_v26 = vpack.c.bf16 %v462_v25, %v462_v25 }
 0x169   : > { %693 = vmatmul.mubr.msk.bf16.vlgmr.msra.gmra.mrb[4].mxu0 %vm348_vm1, %v463_v26 }
 0x23c   : > { %v524_v28 = vpop.f32.mrb[4].mxu0 }
 0x23d   : > { %v525_v29 = vadd.f32 %v655_v27, %v524_v28  ;;  %v694_v30 = vpop.f32.mrb[5].mxu0 }
 0x23e   : > { %v527_v31 = vpop.f32.mrb[6].mxu0 }
 0x23f   : > { %v695_v32 = vpop.f32.mrb[7].mxu0  ;;  %530 = vst.msk [vmem:[%s322_s29] sm:$0xff] %vm348_vm1, %v525_v29 }
 0x240   : > { %876 = shalt.err (!%p873_p2)
}
 0x241   : > { %s877_s12 = scalar_lea.hbm %s1190_s11, 128  ;;  %s881_s14 = scalar_lea.hbm %s1242_s7, 256 }
 0x242   : > { %p878_p13 = scmp.ne.s32.totalorder %s1190_s11, %s877_s12  ;;  %p882_p4 = scmp.lt.u32.totalorder %s1190_s11, %s1242_s7 }
 0x243   : > { %p883_p5 = scmp.lt.u32.totalorder %s881_s14, %s877_s12  ;;  %p885_p8 = scmp.lt.u32.totalorder %s877_s12, %s1190_s11 }
 0x244   : > { %p879_p6 = pnand %p878_p13, %p1256_p0 }
 0x245   : > { %p884_p11 = por %p883_p5, %p882_p4 }
 0x246   : > { %p880_p10 = pneg %p879_p6 }
 0x247   : > { %p886_p1 = por %p885_p8, %p884_p11 }
 0x249   : > { %p887_p3 = pnand %p886_p1, %p880_p10 }
 0x24b   : > { %890 = shalt.err (!%p887_p3)
}
 0x24c   : > { %706 = dma.vmem_to_hbm [thread:$0]  (%p1256_p0), %s1192_s30, 128, %s1190_s11, %s532_s28  }
 0x24d PF: > { %s557_s9 = sand.u32 1, %s921_s24   ;;  %p1257_p7 = scmp.ne.s32.totalorder %s1247_s8, 0 }
 0x24e   : > { %p1258_p9 = scmp.ge.s32.totalorder %s933_s27, 2  ;;  %s558_s20 = scalar_lea.sflag [#allocation4], %s557_s9 }
 0x250   : > { %p720_p12 = pnand %p1258_p9, %p1257_p7 }
 0x252   : > { %916 = dma.done.wait (!%p720_p12), %s558_s20, 128  }
 0x253   : > { %918 = vsyncadd (!%p720_p12), %s558_s20, 4294967168  ;;  %p21_p2 = scmp.ge.s32.totalorder %s1093_s13, 4   ;;  %s1259_s24 = smov %s925_s25 }
 0x254   : > { %s1260_s25 = smov %s929_s26  ;;  %s1261_s26 = smov %s1109_s17 }
 0x255   : > { %s1262_s27 = smov %s1093_s13  ;;  %23 = sbr.rel (!%p21_p2) target bundleno = 6 (0x6), region = 101 }
 0x25c   :  { %563 = vsyncpa [#allocation3], 1 }
 0x25d   :  { %565 = vsyncpa [#allocation3 + $0x1], 1 }
 0x25e   :  { %566 = vsyncpa [#allocation6], 1 }
 0x25f   :  { %567 = vsyncpa [#allocation4], 1 }
 0x260   :  { %569 = vsyncpa [#allocation4 + $0x1], 1 }

</bundles_post_ra>
